<compile_context>
chip_gen: v5e
topology: v5e:2x2
jax: 0.10.0
libtpu: 0.0.40
codegen_flags: <defaults>
</compile_context>

<pallas_src>
import functools
import math

import jax
import jax.numpy as jnp
from jax.experimental import pallas as pl
from jax.experimental.pallas import tpu as pltpu


def _block_kernel(x_ref, ctx_ref,
                  ln1g_ref, ln1b_ref,
                  wqkv_ref, bqkv_ref, wo_ref, bo_ref,
                  ln2g_ref, ln2b_ref,
                  wfc_ref, bfc_ref, wpj_ref, bpj_ref,
                  o_ref, *, n_head):
    T, E = x_ref.shape
    H = n_head
    Dh = E // H
    scale = 1.0 / math.sqrt(Dh)
    eps = 1e-5
    bf16 = jnp.bfloat16
    f32 = jnp.float32

    def layernorm(v, g, b):
        # fused single-pass stats: mean and mean-of-squares (one less XLU reduction)
        mu = jnp.mean(v, axis=-1, keepdims=True)
        ms = jnp.mean(v * v, axis=-1, keepdims=True)
        var = jnp.maximum(ms - mu * mu, 0.0)
        return (v - mu) * jax.lax.rsqrt(var + eps) * g + b

    # residual input: x + context (f32)
    x = x_ref[...].astype(f32) + ctx_ref[...].astype(f32)

    # ---- attention branch (projections done feature-major) ----------------
    h1 = layernorm(x, ln1g_ref[...], ln1b_ref[...])               # (T, E) f32
    h1t = h1.T.astype(bf16)                                       # (E, T)
    # qkv^T = W_in @ h1^T + b_in   (W_in is torch's (3E, E) in_proj weight)
    qkvt = jnp.dot(wqkv_ref[...], h1t,
                   preferred_element_type=f32) + bqkv_ref[...]    # (3E, T) f32

    def heads(rows):                                              # (E, T) -> (H, T, Dh)
        return jnp.swapaxes(rows.reshape(H, Dh, T), 1, 2)

    q = heads(qkvt[:E]).astype(bf16)
    k = heads(qkvt[E:2 * E]).astype(bf16)
    v = heads(qkvt[2 * E:]).astype(bf16)

    # batched-over-heads attention (f32 accumulation on the MXU)
    s = jnp.einsum('hqd,hkd->hqk', q, k,
                   preferred_element_type=f32) * scale            # (H, T, T)
    s = s - jnp.max(s, axis=-1, keepdims=True)
    p = jnp.exp(s)
    p = p * pl.reciprocal(jnp.sum(p, axis=-1, keepdims=True), approx=True)
    o = jnp.einsum('hqk,hkd->hqd', p.astype(bf16), v,
                   preferred_element_type=f32)                    # (H, T, Dh)
    ot = jnp.swapaxes(o, 1, 2).reshape(E, T)                      # concat heads (feature-major)
    # attn^T = W_out @ o^T + b_out (W_out is torch's (E, E) out_proj weight)
    attnt = jnp.dot(wo_ref[...], ot.astype(bf16),
                    preferred_element_type=f32) + bo_ref[...]     # (E, T)
    x = x + attnt.T

    # ---- MLP branch (row-major) --------------------------------------------
    h2 = layernorm(x, ln2g_ref[...], ln2b_ref[...])
    f = jnp.dot(h2.astype(bf16), wfc_ref[...],
                preferred_element_type=f32) + bfc_ref[...]        # (T, 4E)
    f = f * jax.nn.sigmoid(f)                                     # SiLU in f32
    m = jnp.dot(f.astype(bf16), wpj_ref[...],
                preferred_element_type=f32) + bpj_ref[...]        # (T, E)
    x = x + m                                                     # dropout = identity (eval)

    o_ref[...] = x.astype(o_ref.dtype)


def block_forward(x, context, params, *, n_head):
    """x, context: (B, T, E) float32. params: dict of arrays (see make_params)."""
    B, T, E = x.shape
    assert E % n_head == 0, "n_embd must be divisible by n_head"
    H = n_head

    per_batch = pl.BlockSpec((None, T, E), lambda b: (b, 0, 0))
    full = lambda shape: pl.BlockSpec(shape, lambda b: (0,) * len(shape))

    kernel = functools.partial(_block_kernel, n_head=n_head)

    # advisory cost estimate so XLA can schedule around the fused call
    flops = int(B * (24 * T * E * E + 4 * T * T * E))
    transcendentals = int(B * (H * T * T + 4 * E * T + 4 * T))
    weight_bytes = 2 * (3 * E * E + E * E + 4 * E * E + 4 * E * E)   # bf16 weights
    bytes_accessed = int(3 * B * T * E * 4 + weight_bytes + 16 * E * 4)
    cost = pl.CostEstimate(flops=flops, transcendentals=transcendentals,
                           bytes_accessed=bytes_accessed)

    # scoped VMEM sized to the per-step working set (weights are double
    # buffered by the pipeline), clamped under v7x's 64 MiB physical VMEM.
    act_bytes = (24 * T * E + 8 * H * T * T) * 4
    vmem_limit = int(min(max(2 * weight_bytes + act_bytes + (8 << 20), 32 << 20),
                         64 << 20))

    return pl.pallas_call(
        kernel,
        out_shape=jax.ShapeDtypeStruct((B, T, E), x.dtype),
        grid_spec=pltpu.PrefetchScalarGridSpec(
            num_scalar_prefetch=0,
            grid=(B,),
            in_specs=[
                per_batch,                       # x
                per_batch,                       # context
                full((1, E)),                    # ln_1 gamma
                full((1, E)),                    # ln_1 beta
                full((3 * E, E)),                # attn in_proj weight (torch layout, bf16)
                full((3 * E, 1)),                # attn in_proj bias (column)
                full((E, E)),                    # attn out_proj weight (torch layout, bf16)
                full((E, 1)),                    # attn out_proj bias (column)
                full((1, E)),                    # ln_2 gamma
                full((1, E)),                    # ln_2 beta
                full((E, 4 * E)),                # c_fc weight (transposed, bf16)
                full((1, 4 * E)),                # c_fc bias
                full((4 * E, E)),                # c_proj weight (transposed, bf16)
                full((1, E)),                    # c_proj bias
            ],
            out_specs=per_batch,
        ),
        compiler_params=pltpu.CompilerParams(
            dimension_semantics=("parallel",),
            vmem_limit_bytes=vmem_limit),
        cost_estimate=cost,
    )(x, context,
      params["ln1_g"], params["ln1_b"],
      params["w_qkv"], params["b_qkv"],
      params["w_out"], params["b_out"],
      params["ln2_g"], params["ln2_b"],
      params["w_fc"], params["b_fc"],
      params["w_proj"], params["b_proj"])


def make_params(key, n_embd, n_head):
    """Deterministic synthetic parameters matching the PyTorch module shapes."""
    E = n_embd
    ks = jax.random.split(key, 6)
    scale = 0.02
    bf16 = jnp.bfloat16
    return {
        # LayerNorms: gamma=1, beta=0 (PyTorch default init)
        "ln1_g": jnp.ones((1, E), jnp.float32),
        "ln1_b": jnp.zeros((1, E), jnp.float32),
        "ln2_g": jnp.ones((1, E), jnp.float32),
        "ln2_b": jnp.zeros((1, E), jnp.float32),
        # nn.MultiheadAttention: in_proj_weight (3E, E) / out_proj.weight (E, E)
        # kept in torch orientation (kernel computes the transposed products); bf16 for the MXU.
        "w_qkv": (scale * jax.random.normal(ks[0], (3 * E, E), jnp.float32)).astype(bf16),
        "b_qkv": jnp.zeros((3 * E, 1), jnp.float32),
        "w_out": (scale * jax.random.normal(ks[1], (E, E), jnp.float32)).astype(bf16),
        "b_out": jnp.zeros((E, 1), jnp.float32),
        # MLP: stored transposed (x @ W form), bf16 for the MXU; biases f32.
        "w_fc": (scale * jax.random.normal(ks[2], (E, 4 * E), jnp.float32)).astype(bf16),
        "b_fc": 0.01 * jax.random.normal(ks[3], (1, 4 * E), jnp.float32),
        "w_proj": (scale * jax.random.normal(ks[4], (4 * E, E), jnp.float32)).astype(bf16),
        "b_proj": 0.01 * jax.random.normal(ks[5], (1, E), jnp.float32),
    }


if __name__ == "__main__":
    B, T, E, H = 2, 8, 32, 4          # batch, seq, n_embd, n_head
    key = jax.random.PRNGKey(0)
    kx, kc, kp = jax.random.split(key, 3)
    x = jax.random.normal(kx, (B, T, E), jnp.float32)
    context = jax.random.normal(kc, (B, T, E), jnp.float32)
    params = make_params(kp, E, H)

    out = block_forward(x, context, params, n_head=H)
    jax.block_until_ready(out)
    assert out.shape == (B, T, E) and out.dtype == jnp.float32
    print("KERNEL_OK")
</pallas_src>

<mosaic_0001>
module attributes {stable_mosaic.version = 11 : i64} {
  func.func @_block_kernel(%arg0: i32, %arg1: memref<1x8x32xf32, #tpu.memory_space<vmem>>, %arg2: memref<1x8x32xf32, #tpu.memory_space<vmem>>, %arg3: memref<1x32xf32, #tpu.memory_space<vmem>>, %arg4: memref<1x32xf32, #tpu.memory_space<vmem>>, %arg5: memref<96x32xbf16, #tpu.memory_space<vmem>>, %arg6: memref<96x1xf32, #tpu.memory_space<vmem>>, %arg7: memref<32x32xbf16, #tpu.memory_space<vmem>>, %arg8: memref<32x1xf32, #tpu.memory_space<vmem>>, %arg9: memref<1x32xf32, #tpu.memory_space<vmem>>, %arg10: memref<1x32xf32, #tpu.memory_space<vmem>>, %arg11: memref<32x128xbf16, #tpu.memory_space<vmem>>, %arg12: memref<1x128xf32, #tpu.memory_space<vmem>>, %arg13: memref<128x32xbf16, #tpu.memory_space<vmem>>, %arg14: memref<1x32xf32, #tpu.memory_space<vmem>>, %arg15: memref<1x8x32xf32, #tpu.memory_space<vmem>>) attributes {dimension_semantics = [#tpu.dimension_semantics<parallel>], iteration_bounds = array<i64: 2>, scalar_prefetch = 0 : i64, scratch_operands = 0 : i64, tpu.core_type = #tpu.core_type<tc>, window_params = [{transform_indices = @transform_0, window_bounds = array<i64: 1, 8, 32>}, {transform_indices = @transform_1, window_bounds = array<i64: 1, 8, 32>}, {pipeline_mode = #tpu.pipeline_mode<synchronous>, transform_indices = @transform_2, window_bounds = array<i64: 1, 32>}, {pipeline_mode = #tpu.pipeline_mode<synchronous>, transform_indices = @transform_3, window_bounds = array<i64: 1, 32>}, {pipeline_mode = #tpu.pipeline_mode<synchronous>, transform_indices = @transform_4, window_bounds = array<i64: 96, 32>}, {pipeline_mode = #tpu.pipeline_mode<synchronous>, transform_indices = @transform_5, window_bounds = array<i64: 96, 1>}, {pipeline_mode = #tpu.pipeline_mode<synchronous>, transform_indices = @transform_6, window_bounds = array<i64: 32, 32>}, {pipeline_mode = #tpu.pipeline_mode<synchronous>, transform_indices = @transform_7, window_bounds = array<i64: 32, 1>}, {pipeline_mode = #tpu.pipeline_mode<synchronous>, transform_indices = @transform_8, window_bounds = array<i64: 1, 32>}, {pipeline_mode = #tpu.pipeline_mode<synchronous>, transform_indices = @transform_9, window_bounds = array<i64: 1, 32>}, {pipeline_mode = #tpu.pipeline_mode<synchronous>, transform_indices = @transform_10, window_bounds = array<i64: 32, 128>}, {pipeline_mode = #tpu.pipeline_mode<synchronous>, transform_indices = @transform_11, window_bounds = array<i64: 1, 128>}, {pipeline_mode = #tpu.pipeline_mode<synchronous>, transform_indices = @transform_12, window_bounds = array<i64: 128, 32>}, {pipeline_mode = #tpu.pipeline_mode<synchronous>, transform_indices = @transform_13, window_bounds = array<i64: 1, 32>}, {transform_indices = @transform_14, window_bounds = array<i64: 1, 8, 32>}]} {
    %c0 = arith.constant 0 : index
    %c0_0 = arith.constant 0 : index
    %c0_1 = arith.constant 0 : index
    %0 = vector.load %arg1[%c0, %c0_0, %c0_1] : memref<1x8x32xf32, #tpu.memory_space<vmem>>, vector<1x8x32xf32>
    %1 = vector.shape_cast %0 : vector<1x8x32xf32> to vector<8x32xf32>
    %c0_2 = arith.constant 0 : index
    %c0_3 = arith.constant 0 : index
    %c0_4 = arith.constant 0 : index
    %2 = vector.load %arg2[%c0_2, %c0_3, %c0_4] : memref<1x8x32xf32, #tpu.memory_space<vmem>>, vector<1x8x32xf32>
    %3 = vector.shape_cast %2 : vector<1x8x32xf32> to vector<8x32xf32>
    %4 = arith.addf %1, %3 : vector<8x32xf32>
    %c0_5 = arith.constant 0 : index
    %c0_6 = arith.constant 0 : index
    %5 = vector.load %arg3[%c0_5, %c0_6] : memref<1x32xf32, #tpu.memory_space<vmem>>, vector<1x32xf32>
    %c0_7 = arith.constant 0 : index
    %c0_8 = arith.constant 0 : index
    %6 = vector.load %arg4[%c0_7, %c0_8] : memref<1x32xf32, #tpu.memory_space<vmem>>, vector<1x32xf32>
    %cst = arith.constant dense<0.000000e+00> : vector<8xf32>
    %7 = vector.multi_reduction <add>, %4, %cst [1] : vector<8x32xf32> to vector<8xf32>
    %8 = vector.shape_cast %7 : vector<8xf32> to vector<8x1xf32>
    %cst_9 = arith.constant 3.200000e+01 : f32
    %9 = vector.broadcast %cst_9 : f32 to vector<8x1xf32>
    %10 = arith.divf %8, %9 : vector<8x1xf32>
    %11 = arith.mulf %4, %4 : vector<8x32xf32>
    %cst_10 = arith.constant dense<0.000000e+00> : vector<8xf32>
    %12 = vector.multi_reduction <add>, %11, %cst_10 [1] : vector<8x32xf32> to vector<8xf32>
    %13 = vector.shape_cast %12 : vector<8xf32> to vector<8x1xf32>
    %cst_11 = arith.constant 3.200000e+01 : f32
    %14 = vector.broadcast %cst_11 : f32 to vector<8x1xf32>
    %15 = arith.divf %13, %14 : vector<8x1xf32>
    %16 = arith.mulf %10, %10 : vector<8x1xf32>
    %17 = arith.subf %15, %16 : vector<8x1xf32>
    %cst_12 = arith.constant 0.000000e+00 : f32
    %18 = vector.broadcast %cst_12 : f32 to vector<8x1xf32>
    %19 = arith.maximumf %17, %18 : vector<8x1xf32>
    %20 = vector.broadcast %10 : vector<8x1xf32> to vector<8x32xf32>
    %21 = arith.subf %4, %20 : vector<8x32xf32>
    %cst_13 = arith.constant 9.99999974E-6 : f32
    %22 = vector.broadcast %cst_13 : f32 to vector<8x1xf32>
    %23 = arith.addf %19, %22 : vector<8x1xf32>
    %24 = math.rsqrt %23 : vector<8x1xf32>
    %25 = vector.broadcast %24 : vector<8x1xf32> to vector<8x32xf32>
    %26 = arith.mulf %21, %25 : vector<8x32xf32>
    %27 = vector.broadcast %5 : vector<1x32xf32> to vector<8x32xf32>
    %28 = arith.mulf %26, %27 : vector<8x32xf32>
    %29 = vector.broadcast %6 : vector<1x32xf32> to vector<8x32xf32>
    %30 = arith.addf %28, %29 : vector<8x32xf32>
    %31 = tpu.transpose %30, [1, 0] : vector<8x32xf32> -> vector<32x8xf32>
    %32 = arith.truncf %31 : vector<32x8xf32> to vector<32x8xbf16>
    %c0_14 = arith.constant 0 : index
    %c0_15 = arith.constant 0 : index
    %33 = vector.load %arg5[%c0_14, %c0_15] : memref<96x32xbf16, #tpu.memory_space<vmem>>, vector<96x32xbf16>
    %cst_16 = arith.constant dense<0.000000e+00> : vector<96x8xf32>
    %34 = tpu.matmul %33, %32, %cst_16 {dimension_numbers = #tpu.dot_dimension_numbers<[1], [0], [0], [1], [0, 0, 1, 1], [], []>} : vector<96x32xbf16>, vector<32x8xbf16>, vector<96x8xf32> -> vector<96x8xf32>
    %c0_17 = arith.constant 0 : index
    %c0_18 = arith.constant 0 : index
    %35 = vector.load %arg6[%c0_17, %c0_18] : memref<96x1xf32, #tpu.memory_space<vmem>>, vector<96x1xf32>
    %36 = vector.broadcast %35 : vector<96x1xf32> to vector<96x8xf32>
    %37 = arith.addf %34, %36 : vector<96x8xf32>
    %38 = vector.extract_strided_slice %37 {offsets = [0, 0], sizes = [32, 8], strides = [1, 1]} : vector<96x8xf32> to vector<32x8xf32>
    %39 = vector.shape_cast %38 : vector<32x8xf32> to vector<4x8x8xf32>
    %40 = tpu.transpose %39, [0, 2, 1] : vector<4x8x8xf32> -> vector<4x8x8xf32>
    %41 = arith.truncf %40 : vector<4x8x8xf32> to vector<4x8x8xbf16>
    %42 = vector.extract_strided_slice %37 {offsets = [32, 0], sizes = [32, 8], strides = [1, 1]} : vector<96x8xf32> to vector<32x8xf32>
    %43 = vector.shape_cast %42 : vector<32x8xf32> to vector<4x8x8xf32>
    %44 = tpu.transpose %43, [0, 2, 1] : vector<4x8x8xf32> -> vector<4x8x8xf32>
    %45 = arith.truncf %44 : vector<4x8x8xf32> to vector<4x8x8xbf16>
    %46 = vector.extract_strided_slice %37 {offsets = [64, 0], sizes = [32, 8], strides = [1, 1]} : vector<96x8xf32> to vector<32x8xf32>
    %47 = vector.shape_cast %46 : vector<32x8xf32> to vector<4x8x8xf32>
    %48 = tpu.transpose %47, [0, 2, 1] : vector<4x8x8xf32> -> vector<4x8x8xf32>
    %49 = arith.truncf %48 : vector<4x8x8xf32> to vector<4x8x8xbf16>
    "tpu.trace_start"() <{level = 10 : i32, message = "hqd,hkd->hqk"}> : () -> ()
    %cst_19 = arith.constant dense<0.000000e+00> : vector<4x8x8xf32>
    %50 = tpu.matmul %41, %45, %cst_19 {dimension_numbers = #tpu.dot_dimension_numbers<[2], [2], [1], [1], [0, 0, 0, 1, 1, 1], [0], [0]>} : vector<4x8x8xbf16>, vector<4x8x8xbf16>, vector<4x8x8xf32> -> vector<4x8x8xf32>
    "tpu.trace_stop"() : () -> ()
    %cst_20 = arith.constant 0.353553385 : f32
    %51 = vector.broadcast %cst_20 : f32 to vector<4x8x8xf32>
    %52 = arith.mulf %50, %51 : vector<4x8x8xf32>
    %cst_21 = arith.constant dense<0xFF800000> : vector<4x8xf32>
    %53 = vector.multi_reduction <maximumf>, %52, %cst_21 [2] : vector<4x8x8xf32> to vector<4x8xf32>
    %54 = vector.shape_cast %53 : vector<4x8xf32> to vector<4x8x1xf32>
    %55 = vector.broadcast %54 : vector<4x8x1xf32> to vector<4x8x8xf32>
    %56 = arith.subf %52, %55 : vector<4x8x8xf32>
    %57 = math.exp %56 : vector<4x8x8xf32>
    %cst_22 = arith.constant dense<0.000000e+00> : vector<4x8xf32>
    %58 = vector.multi_reduction <add>, %57, %cst_22 [2] : vector<4x8x8xf32> to vector<4x8xf32>
    %59 = vector.shape_cast %58 : vector<4x8xf32> to vector<4x8x1xf32>
    %60 = tpu.reciprocal %59 {approx = true} : vector<4x8x1xf32> -> vector<4x8x1xf32>
    %61 = vector.broadcast %60 : vector<4x8x1xf32> to vector<4x8x8xf32>
    %62 = arith.mulf %57, %61 : vector<4x8x8xf32>
    %63 = arith.truncf %62 : vector<4x8x8xf32> to vector<4x8x8xbf16>
    "tpu.trace_start"() <{level = 10 : i32, message = "hqk,hkd->hqd"}> : () -> ()
    %cst_23 = arith.constant dense<0.000000e+00> : vector<4x8x8xf32>
    %64 = tpu.matmul %63, %49, %cst_23 {dimension_numbers = #tpu.dot_dimension_numbers<[2], [1], [1], [2], [0, 0, 0, 1, 1, 2], [0], [0]>} : vector<4x8x8xbf16>, vector<4x8x8xbf16>, vector<4x8x8xf32> -> vector<4x8x8xf32>
    "tpu.trace_stop"() : () -> ()
    %65 = tpu.transpose %64, [0, 2, 1] : vector<4x8x8xf32> -> vector<4x8x8xf32>
    %66 = vector.shape_cast %65 : vector<4x8x8xf32> to vector<32x8xf32>
    %c0_24 = arith.constant 0 : index
    %c0_25 = arith.constant 0 : index
    %67 = vector.load %arg7[%c0_24, %c0_25] : memref<32x32xbf16, #tpu.memory_space<vmem>>, vector<32x32xbf16>
    %68 = arith.truncf %66 : vector<32x8xf32> to vector<32x8xbf16>
    %cst_26 = arith.constant dense<0.000000e+00> : vector<32x8xf32>
    %69 = tpu.matmul %67, %68, %cst_26 {dimension_numbers = #tpu.dot_dimension_numbers<[1], [0], [0], [1], [0, 0, 1, 1], [], []>} : vector<32x32xbf16>, vector<32x8xbf16>, vector<32x8xf32> -> vector<32x8xf32>
    %c0_27 = arith.constant 0 : index
    %c0_28 = arith.constant 0 : index
    %70 = vector.load %arg8[%c0_27, %c0_28] : memref<32x1xf32, #tpu.memory_space<vmem>>, vector<32x1xf32>
    %71 = vector.broadcast %70 : vector<32x1xf32> to vector<32x8xf32>
    %72 = arith.addf %69, %71 : vector<32x8xf32>
    %73 = tpu.transpose %72, [1, 0] : vector<32x8xf32> -> vector<8x32xf32>
    %74 = arith.addf %4, %73 : vector<8x32xf32>
    %c0_29 = arith.constant 0 : index
    %c0_30 = arith.constant 0 : index
    %75 = vector.load %arg9[%c0_29, %c0_30] : memref<1x32xf32, #tpu.memory_space<vmem>>, vector<1x32xf32>
    %c0_31 = arith.constant 0 : index
    %c0_32 = arith.constant 0 : index
    %76 = vector.load %arg10[%c0_31, %c0_32] : memref<1x32xf32, #tpu.memory_space<vmem>>, vector<1x32xf32>
    %cst_33 = arith.constant dense<0.000000e+00> : vector<8xf32>
    %77 = vector.multi_reduction <add>, %74, %cst_33 [1] : vector<8x32xf32> to vector<8xf32>
    %78 = vector.shape_cast %77 : vector<8xf32> to vector<8x1xf32>
    %cst_34 = arith.constant 3.200000e+01 : f32
    %79 = vector.broadcast %cst_34 : f32 to vector<8x1xf32>
    %80 = arith.divf %78, %79 : vector<8x1xf32>
    %81 = arith.mulf %74, %74 : vector<8x32xf32>
    %cst_35 = arith.constant dense<0.000000e+00> : vector<8xf32>
    %82 = vector.multi_reduction <add>, %81, %cst_35 [1] : vector<8x32xf32> to vector<8xf32>
    %83 = vector.shape_cast %82 : vector<8xf32> to vector<8x1xf32>
    %cst_36 = arith.constant 3.200000e+01 : f32
    %84 = vector.broadcast %cst_36 : f32 to vector<8x1xf32>
    %85 = arith.divf %83, %84 : vector<8x1xf32>
    %86 = arith.mulf %80, %80 : vector<8x1xf32>
    %87 = arith.subf %85, %86 : vector<8x1xf32>
    %cst_37 = arith.constant 0.000000e+00 : f32
    %88 = vector.broadcast %cst_37 : f32 to vector<8x1xf32>
    %89 = arith.maximumf %87, %88 : vector<8x1xf32>
    %90 = vector.broadcast %80 : vector<8x1xf32> to vector<8x32xf32>
    %91 = arith.subf %74, %90 : vector<8x32xf32>
    %cst_38 = arith.constant 9.99999974E-6 : f32
    %92 = vector.broadcast %cst_38 : f32 to vector<8x1xf32>
    %93 = arith.addf %89, %92 : vector<8x1xf32>
    %94 = math.rsqrt %93 : vector<8x1xf32>
    %95 = vector.broadcast %94 : vector<8x1xf32> to vector<8x32xf32>
    %96 = arith.mulf %91, %95 : vector<8x32xf32>
    %97 = vector.broadcast %75 : vector<1x32xf32> to vector<8x32xf32>
    %98 = arith.mulf %96, %97 : vector<8x32xf32>
    %99 = vector.broadcast %76 : vector<1x32xf32> to vector<8x32xf32>
    %100 = arith.addf %98, %99 : vector<8x32xf32>
    %101 = arith.truncf %100 : vector<8x32xf32> to vector<8x32xbf16>
    %c0_39 = arith.constant 0 : index
    %c0_40 = arith.constant 0 : index
    %102 = vector.load %arg11[%c0_39, %c0_40] : memref<32x128xbf16, #tpu.memory_space<vmem>>, vector<32x128xbf16>
    %cst_41 = arith.constant dense<0.000000e+00> : vector<8x128xf32>
    %103 = tpu.matmul %101, %102, %cst_41 {dimension_numbers = #tpu.dot_dimension_numbers<[1], [0], [0], [1], [0, 0, 1, 1], [], []>} : vector<8x32xbf16>, vector<32x128xbf16>, vector<8x128xf32> -> vector<8x128xf32>
    %c0_42 = arith.constant 0 : index
    %c0_43 = arith.constant 0 : index
    %104 = vector.load %arg12[%c0_42, %c0_43] : memref<1x128xf32, #tpu.memory_space<vmem>>, vector<1x128xf32>
    %105 = vector.broadcast %104 : vector<1x128xf32> to vector<8x128xf32>
    %106 = arith.addf %103, %105 : vector<8x128xf32>
    %107 = arith.negf %106 : vector<8x128xf32>
    %108 = math.exp %107 : vector<8x128xf32>
    %cst_44 = arith.constant 1.000000e+00 : f32
    %109 = vector.broadcast %cst_44 : f32 to vector<8x128xf32>
    %110 = arith.addf %109, %108 : vector<8x128xf32>
    %111 = arith.divf %109, %110 : vector<8x128xf32>
    %112 = arith.mulf %106, %111 : vector<8x128xf32>
    %113 = arith.truncf %112 : vector<8x128xf32> to vector<8x128xbf16>
    %c0_45 = arith.constant 0 : index
    %c0_46 = arith.constant 0 : index
    %114 = vector.load %arg13[%c0_45, %c0_46] : memref<128x32xbf16, #tpu.memory_space<vmem>>, vector<128x32xbf16>
    %cst_47 = arith.constant dense<0.000000e+00> : vector<8x32xf32>
    %115 = tpu.matmul %113, %114, %cst_47 {dimension_numbers = #tpu.dot_dimension_numbers<[1], [0], [0], [1], [0, 0, 1, 1], [], []>} : vector<8x128xbf16>, vector<128x32xbf16>, vector<8x32xf32> -> vector<8x32xf32>
    %c0_48 = arith.constant 0 : index
    %c0_49 = arith.constant 0 : index
    %116 = vector.load %arg14[%c0_48, %c0_49] : memref<1x32xf32, #tpu.memory_space<vmem>>, vector<1x32xf32>
    %117 = vector.broadcast %116 : vector<1x32xf32> to vector<8x32xf32>
    %118 = arith.addf %115, %117 : vector<8x32xf32>
    %119 = arith.addf %74, %118 : vector<8x32xf32>
    %c0_50 = arith.constant 0 : index
    %c0_51 = arith.constant 0 : index
    %c0_52 = arith.constant 0 : index
    %120 = vector.load %arg15[%c0_50, %c0_51, %c0_52] : memref<1x8x32xf32, #tpu.memory_space<vmem>>, vector<1x8x32xf32>
    %121 = vector.shape_cast %120 : vector<1x8x32xf32> to vector<8x32xf32>
    %122 = vector.shape_cast %119 : vector<8x32xf32> to vector<1x8x32xf32>
    tpu.vector_store %arg15[%c0_50, %c0_51, %c0_52], %122 {strides = array<i32>} : memref<1x8x32xf32, #tpu.memory_space<vmem>>, vector<1x8x32xf32>,
    return
  }
  func.func @transform_0(%arg0: i32) -> (i32, i32, i32) {
    %c0_i32 = arith.constant 0 : i32
    %c0_i32_0 = arith.constant 0 : i32
    %c0_i32_1 = arith.constant 0 : i32
    return %arg0, %c0_i32, %c0_i32_0 : i32, i32, i32
  }
  func.func @transform_1(%arg0: i32) -> (i32, i32, i32) {
    %c0_i32 = arith.constant 0 : i32
    %c0_i32_0 = arith.constant 0 : i32
    %c0_i32_1 = arith.constant 0 : i32
    return %arg0, %c0_i32, %c0_i32_0 : i32, i32, i32
  }
  func.func @transform_2(%arg0: i32) -> (i32, i32) {
    %c0_i32 = arith.constant 0 : i32
    %c0_i32_0 = arith.constant 0 : i32
    %c0_i32_1 = arith.constant 0 : i32
    return %c0_i32, %c0_i32_0 : i32, i32
  }
  func.func @transform_3(%arg0: i32) -> (i32, i32) {
    %c0_i32 = arith.constant 0 : i32
    %c0_i32_0 = arith.constant 0 : i32
    %c0_i32_1 = arith.constant 0 : i32
    return %c0_i32, %c0_i32_0 : i32, i32
  }
  func.func @transform_4(%arg0: i32) -> (i32, i32) {
    %c0_i32 = arith.constant 0 : i32
    %c0_i32_0 = arith.constant 0 : i32
    %c0_i32_1 = arith.constant 0 : i32
    return %c0_i32, %c0_i32_0 : i32, i32
  }
  func.func @transform_5(%arg0: i32) -> (i32, i32) {
    %c0_i32 = arith.constant 0 : i32
    %c0_i32_0 = arith.constant 0 : i32
    %c0_i32_1 = arith.constant 0 : i32
    return %c0_i32, %c0_i32_0 : i32, i32
  }
  func.func @transform_6(%arg0: i32) -> (i32, i32) {
    %c0_i32 = arith.constant 0 : i32
    %c0_i32_0 = arith.constant 0 : i32
    %c0_i32_1 = arith.constant 0 : i32
    return %c0_i32, %c0_i32_0 : i32, i32
  }
  func.func @transform_7(%arg0: i32) -> (i32, i32) {
    %c0_i32 = arith.constant 0 : i32
    %c0_i32_0 = arith.constant 0 : i32
    %c0_i32_1 = arith.constant 0 : i32
    return %c0_i32, %c0_i32_0 : i32, i32
  }
  func.func @transform_8(%arg0: i32) -> (i32, i32) {
    %c0_i32 = arith.constant 0 : i32
    %c0_i32_0 = arith.constant 0 : i32
    %c0_i32_1 = arith.constant 0 : i32
    return %c0_i32, %c0_i32_0 : i32, i32
  }
  func.func @transform_9(%arg0: i32) -> (i32, i32) {
    %c0_i32 = arith.constant 0 : i32
    %c0_i32_0 = arith.constant 0 : i32
    %c0_i32_1 = arith.constant 0 : i32
    return %c0_i32, %c0_i32_0 : i32, i32
  }
  func.func @transform_10(%arg0: i32) -> (i32, i32) {
    %c0_i32 = arith.constant 0 : i32
    %c0_i32_0 = arith.constant 0 : i32
    %c0_i32_1 = arith.constant 0 : i32
    return %c0_i32, %c0_i32_0 : i32, i32
  }
  func.func @transform_11(%arg0: i32) -> (i32, i32) {
    %c0_i32 = arith.constant 0 : i32
    %c0_i32_0 = arith.constant 0 : i32
    %c0_i32_1 = arith.constant 0 : i32
    return %c0_i32, %c0_i32_0 : i32, i32
  }
  func.func @transform_12(%arg0: i32) -> (i32, i32) {
    %c0_i32 = arith.constant 0 : i32
    %c0_i32_0 = arith.constant 0 : i32
    %c0_i32_1 = arith.constant 0 : i32
    return %c0_i32, %c0_i32_0 : i32, i32
  }
  func.func @transform_13(%arg0: i32) -> (i32, i32) {
    %c0_i32 = arith.constant 0 : i32
    %c0_i32_0 = arith.constant 0 : i32
    %c0_i32_1 = arith.constant 0 : i32
    return %c0_i32, %c0_i32_0 : i32, i32
  }
  func.func @transform_14(%arg0: i32) -> (i32, i32, i32) {
    %c0_i32 = arith.constant 0 : i32
    %c0_i32_0 = arith.constant 0 : i32
    %c0_i32_1 = arith.constant 0 : i32
    return %arg0, %c0_i32, %c0_i32_0 : i32, i32, i32
  }
}

</mosaic_0001>

<bundles_post_ra>
// kernel: tpu_custom_call.1
= control target key start
LH: loop header
LB: loop body
LE: loop exit
PB: predicated region body
PF: predicated region fallthrough
CT: control target
= control target key end

     0   :  { %s2481_s0 = inlined_call_operand.vmem [shape: f32[2,8,32], index: 0, kind: input, shape index: {}]   ;;  %s2482_s1 = inlined_call_operand.vmem [shape: f32[2,8,32], index: 1, kind: input, shape index: {}]   ;;  %s2483_s2 = inlined_call_operand.vmem [shape: f32[1,32], index: 2, kind: input, shape index: {}]   ;;  %s2484_s3 = inlined_call_operand.vmem [shape: f32[1,32], index: 3, kind: input, shape index: {}]   ;;  %s2485_s4 = inlined_call_operand.vmem [shape: bf16[96,32], index: 4, kind: input, shape index: {}]   ;;  %s2486_s5 = inlined_call_operand.vmem [shape: f32[96,1], index: 5, kind: input, shape index: {}]   ;;  %s2487_s6 = inlined_call_operand.vmem [shape: bf16[32,32], index: 6, kind: input, shape index: {}]   ;;  %s2488_s7 = inlined_call_operand.vmem [shape: f32[32,1], index: 7, kind: input, shape index: {}]   ;;  %s2489_s8 = inlined_call_operand.vmem [shape: f32[1,32], index: 8, kind: input, shape index: {}]   ;;  %s2490_s9 = inlined_call_operand.vmem [shape: f32[1,32], index: 9, kind: input, shape index: {}]   ;;  %s2491_s10 = inlined_call_operand.vmem [shape: bf16[32,128], index: 10, kind: input, shape index: {}]   ;;  %s2492_s11 = inlined_call_operand.vmem [shape: f32[1,128], index: 11, kind: input, shape index: {}]   ;;  %s2493_s12 = inlined_call_operand.vmem [shape: bf16[128,32], index: 12, kind: input, shape index: {}]   ;;  %s2494_s13 = inlined_call_operand.vmem [shape: f32[1,32], index: 13, kind: input, shape index: {}]   ;;  %s2495_s14 = inlined_call_operand.hbm [shape: f32[2,8,32], index: 14, kind: output, shape index: {}]  }
   0x1   :  { %2496 = sst [smem:[#allocation6_spill]] %s2481_s0 }
   0x2   :  { %2497 = sst [smem:[#allocation7_spill]] %s2482_s1 }
   0x3   :  { %2498 = sst [smem:[#allocation8_spill]] %s2483_s2 }
   0x4   :  { %2499 = sst [smem:[#allocation9_spill]] %s2484_s3 }
   0x5   :  { %19 = vsyncpa [#allocation3], 0 }
   0x6   :  { %21 = vsyncpa [#allocation3 + $0x1], 0  ;;  %s2204_s29 = smov 0   ;;  %s2206_s30 = smov 0  }
   0x7   :  { %s2208_s15 = smov 0   ;;  %s2210_s16 = smov 0  }
   0x8 LB: > { %s2225_s17 = sadd.s32 4294967295, %s2125_s16   ;;  %s1823_s18 = sadd.s32 4294967294, %s2125_s16   ;;  %s2125_s16 = sphi %s2210_s16, %s2511_s16   ;;  %s2121_s15 = sphi %s2208_s15, %s2510_s15   ;;  %s2117_s30 = sphi %s2206_s30, %s2509_s30   ;;  %s2113_s29 = sphi %s2204_s29, %s2508_s29  }
   0x9   : > { %s2229_s19 = sadd.s32 1, %s2125_s16   ;;  %s338_s20 = sadd.s32 1, %s2121_s15 }
   0xa   : > { %s335_s21 = ssub.s32 %s2125_s16, %s2229_s19  ;;  %p348_p0 = scmp.ne.s32.totalorder %s2121_s15, %s2117_s30 }
   0xb   : > { %p336_p1 = scmp.eq.s32.totalorder %s335_s21, 0  ;;  %p349_p2 = scmp.eq.s32.totalorder %s2225_s17, 1 }
   0xc   : > { %p354_p3 = scmp.ne.s32.totalorder %s2117_s30, %s2113_s29  ;;  %p355_p4 = scmp.eq.s32.totalorder %s1823_s18, 1 }
   0xd   : > { %s2240_s22 = scalar_select %p336_p1, %s2121_s15, %s338_s20  }
   0xe   : > { %p2242_p5 = por %p349_p2, %p348_p0  ;;  %p2246_p6 = por %p355_p4, %p354_p3 }
   0xf   : > { %2500 = sst [smem:[#allocation5_spill]] %s2240_s22  ;;  %p1826_p7 = scmp.ge.s32.totalorder %s2125_s16, 1 }
  0x10   : > { %p423_p8 = scmp.lt.s32.totalorder %s2125_s16, 3 }
  0x12   : > { %p424_p9 = pnand %p1826_p7, %p423_p8 }
  0x13   : > { %p472_p10 = scmp.lt.s32.totalorder (!%p424_p9), %s2225_s17, 1  ;;  %s2503_s0 = sld [smem:[#allocation6_spill]] (!%p424_p9) }
  0x14   : > { %427 = sbr.rel (%p424_p9) target bundleno = 2311 (0x907), region = 76  ;;  %s2504_s1 = sld [smem:[#allocation7_spill]] (!%p424_p9) }
  0x15   : > { %s2505_s2 = sld [smem:[#allocation8_spill]] (!%p424_p9)  ;;  %s1921_s21 = sshll.u32 (!%p424_p9), %s2225_s17, 3 }
  0x16   : > { %s2506_s3 = sld [smem:[#allocation9_spill]] (!%p424_p9) }
  0x19   : > { %s473_s25 = scalar_select %p472_p10, %s2225_s17, 1  ;;  %vm486_vm0 = vcmask 261120   ;;  %v2127_v6 = vmov 32.0   ;;  %v573_v35 = vld [vmem:[%s2486_s5] sm:$0xff]  ;;  %v2128_v36 = vmov 0   ;;  %v578_v39 = vld [vmem:[%s2486_s5 + $0x28] sm:$0xff] }
  0x1a   : > { %2037 = vrcp.f32 %v2127_v6  ;;  %1987 = vset.pattern.permute.xlu2 %v2128_v36  ;;  %1988 = vset.pattern.permute.xlu0 %v2128_v36  ;;  %v580_v42 = vld [vmem:[%s2486_s5 + $0x38] sm:$0xff]  ;;  %v1924_v44 = vld [vmem:[%s2485_s4] sm:$0xff]  ;;  %v574_v45 = vld [vmem:[%s2486_s5 + $0x8] sm:$0xff]  ;;  %vm1128_vm5 = vcmask 64512   ;;  %vm1260_vm6 = vcmask 1043456  }
  0x1b   : > { %s1828_s26 = sshll.u32 %s473_s25, 3  ;;  %v2031_v28 = vld [vmem:[%s2505_s2] ss:$0 sm:$0xff]  ;;  %587 = vperm.xlu2 %1987, %v573_v35   ;;  %v575_v47 = vld [vmem:[%s2486_s5 + $0x10] sm:$0xff]  ;;  %v1925_v48 = vld [vmem:[%s2485_s4 + $0x8] sm:$0xff] }
  0x1c   : > { %s475_s18 = scalar_lea.vmem %s2503_s0, %s1828_s26  ;;  %s479_s22 = scalar_lea.vmem %s2504_s1, %s1828_s26  ;;  %v2032_v31 = vld [vmem:[%s2506_s3] ss:$0 sm:$0xff]  ;;  %v576_v49 = vld [vmem:[%s2486_s5 + $0x18] sm:$0xff]  ;;  %v1926_v51 = vld [vmem:[%s2485_s4 + $0x10] sm:$0xff] }
  0x1d   : > { %v481_v0 = vld [vmem:[%s475_s18] sm:$0xff]  ;;  %v579_v52 = vld [vmem:[%s2486_s5 + $0x30] sm:$0xff]  ;;  %v1927_v53 = vld [vmem:[%s2485_s4 + $0x18] sm:$0xff]  ;;  %s469_s1 = sand.u32 1, %s2117_s30   ;;  %s1747_s0 = scalar_lea.hbm %s2495_s14, %s1921_s21 }
  0x1e   : > { %v482_v1 = vld [vmem:[%s479_s22] sm:$0xff]  ;;  %s1827_s20 = sshll.u32 %s469_s1, 3  ;;  %s1751_s2 = sshll.u32 %s1747_s0, 4  ;;  %s1752_s2 = int_to_ptr.hbm [resolvable:$true] %s1751_s2 }
  0x1f   : > { %v2260_v2 = vadd.f32 %v482_v1, %v481_v0  ;;  %v577_v46 = vld [vmem:[%s2486_s5 + $0x20] sm:$0xff]  ;;  %s471_s28 = scalar_lea.vmem [#allocation2], %s1827_s20  ;;  %s1737_s17 = scalar_lea.sflag [#allocation3], %s469_s1 }
  0x20   : > { %v2038_v7 = vpop.eup %2037  ;;  %v581_v50 = vld [vmem:[%s2486_s5 + $0x40] sm:$0xff]  ;;  %s1749_s18 = sshll.u32 %s471_s28, 4  ;;  %s2077_s3 = sshra.s32 %s1752_s2, 4  ;;  %s1750_s18 = int_to_ptr.vmem [resolvable:$true] %s1749_s18  ;;  %s2078_s3 = int_to_ptr.hbm [resolvable:$true] %s2077_s3 }
  0x21   : > { %v487_v3 = vsel %vm486_vm0, %v2260_v2, 0.0  ;;  %v498_v4 = vmul.f32 %v2260_v2, %v2260_v2  ;;  %v491_v8 = vmul.f32 32.0, %v2038_v7  ;;  %vm495_vm1 = vweird.f32 %v2038_v7  ;;  %v1928_v54 = vld [vmem:[%s2485_s4 + $0x20] sm:$0xff]  ;;  %s2079_s22 = scalar_lea.hbm %s2078_s3, 8  ;;  %s2083_s20 = scalar_lea.hbm %s2495_s14, 16 }
  0x22   : > { %488 = vadd.xlane.f32.xlu0 %v487_v3  ;;  %v1929_v3 = vld [vmem:[%s2485_s4 + $0x28] sm:$0xff]  ;;  %p2080_p11 = scmp.ne.s32.totalorder %s2078_s3, %s2079_s22  ;;  %p2084_p0 = scmp.lt.s32.totalorder %s2078_s3, %s2495_s14 }
  0x23   : > { %v499_v5 = vsel %vm486_vm0, %v498_v4, 0.0  ;;  %v492_v9 = vsub.f32 1.0, %v491_v8  ;;  %612 = vperm.xlu2 %1987, %v578_v39   ;;  %p2085_p1 = scmp.lt.s32.totalorder %s2083_s20, %s2079_s22 }
  0x24   : > { %p2081_p12 = pnand %p2080_p11, %p2242_p5 }
  0x25   : > { %v493_v10 = vmul.f32 %v2038_v7, %v492_v9  ;;  %p2086_p2 = por %p2085_p1, %p2084_p0 }
  0x26   : > { %p2082_p13 = pneg %p2081_p12 }
  0x27   : > { %v494_v11 = vadd.f32 %v2038_v7, %v493_v10 }
  0x28   : > { %p2087_p3 = pnand %p2086_p2, %p2082_p13 }
  0x29   : > { %v2267_v13 = vsel %vm495_vm1, %v2038_v7, %v494_v11 }
  0x2a   : > { %500 = vadd.xlane.f32.xlu0 %v499_v5 }
  0x2b   : > { %622 = vperm.xlu2 %1987, %v580_v42  }
  0x33   : > { %592 = vperm.xlu2 %1987, %v574_v45  }
  0x3b   : > { %597 = vperm.xlu2 %1987, %v575_v47  }
  0x3e   : > { %617 = vperm.xlu0 %1988, %v579_v52  }
  0x43   : > { %602 = vperm.xlu2 %1987, %v576_v49  }
  0x75   : > { %v588_v56 = vpop.permute.xlu2 %587 }
  0x7d   : > { %v613_v58 = vpop.permute.xlu2 %612 }
  0x85   : > { %v623_v61 = vpop.permute.xlu2 %622 }
  0x8d   : > { %v593_v1 = vpop.permute.xlu2 %592 }
  0x95   : > { %v489_v12 = vpop.xlane.xlu0 %488  ;;  %v598_v8 = vpop.permute.xlu2 %597 }
  0x96   : > { %v497_v14 = vmul.f32 %v2267_v13, %v489_v12 }
  0x98   : > { %v503_v16 = vmul.f32 %v497_v14, %v497_v14  ;;  %v506_v27 = vsub.f32 %v2260_v2, %v497_v14 }
  0x9d   : > { %v501_v15 = vpop.xlane.xlu0 %500 }
  0x9e   : > { %v502_v17 = vmul.f32 %v501_v15, %v2267_v13 }
  0xa0   : > { %v504_v18 = vsub.f32 %v502_v17, %v503_v16 }
  0xa2   : > { %v505_v19 = vmax.f32 %v504_v18, 0.0 }
  0xa4   : > { %v507_v20 = vadd.f32 1e-05, %v505_v19  ;;  %v603_v19 = vpop.permute.xlu2 %602 }
  0xa6   : > { %2039 = vrsqrt.f32 %v507_v20  ;;  %vm514_vm3 = vweird.f32 %v507_v20 }
  0xac   : > { %v2040_v21 = vpop.eup %2039 }
  0xad   : > { %v509_v22 = vmul.f32 %v2040_v21, %v507_v20  ;;  %vm515_vm2 = vweird.f32 %v2040_v21 }
  0xae   : > { %vm516_vm4 = vmor %vm514_vm3, %vm515_vm2 }
  0xaf   : > { %v510_v23 = vmul.f32 %v2040_v21, %v509_v22 }
  0xb0   : > { %v618_v14 = vpop.permute.xlu0 %617 }
  0xb1   : > { %v511_v24 = vmul.f32 0.5, %v510_v23 }
  0xb3   : > { %v512_v25 = vsub.f32 1.5, %v511_v24 }
  0xb5   : > { %v513_v26 = vmul.f32 %v2040_v21, %v512_v25 }
  0xb7   : > { %v517_v29 = vsel %vm516_vm4, %v2040_v21, %v513_v26  ;;  %v584_v21 = vld [vmem:[%s2486_s5 + $0x58] sm:$0xff] }
  0xb8   : > { %v518_v30 = vmul.f32 %v517_v29, %v506_v27 }
  0xba   : > { %v522_v32 = vmul.f32 %v2031_v28, %v518_v30 }
  0xbc   : > { %v526_v33 = vadd.f32 %v2032_v31, %v522_v32 }
  0xbe   : > { %527 = vxpose.xlu1.b32.start.end [1/1] (short) (narrow) %v526_v33, 32 }
 0x111   : > { %1986 = vset.pattern.permute.xlu1 %v2128_v36 }
 0x130   : > { %607 = vperm.xlu1 %1986, %v577_v46  }
 0x138   : > { %627 = vperm.xlu1 %1986, %v581_v50  }
 0x162   : > { %v543_v34 = vpop.trf.xlu1 }
 0x16a   : > { %v544_v37 = vpop.trf.xlu1 }
 0x16b   : > { %v559_v43 = vpack.c.bf16 %v544_v37, %v543_v34 }
 0x172   : > { %v545_v38 = vpop.trf.xlu1 }
 0x17a   : > { %v546_v40 = vpop.trf.xlu1 }
 0x17b   : > { %v560_v41 = vpack.c.bf16 %v546_v40, %v545_v38 }
 0x17d   : > { %699 = vmatpush.bf16.msra.mxu0 %v560_v41  ;;  %1942 = vmatpush.bf16.msra.mxu1 %v560_v41 }
 0x181   : > { %700 = vmatpush.bf16.msra.mxu0 %v559_v43  ;;  %1943 = vmatpush.bf16.msra.mxu1 %v559_v43 }
 0x184   : > { %1854 = vmatmul.msk.bf16.vlgmr.msra.gmra.mxu0 %vm486_vm0, %v1924_v44  ;;  %1859 = vmatmul.msk.bf16.vlgmr.msra.gmra.mxu1 %vm486_vm0, %v1929_v3 }
 0x194   : > { %1855 = vmatmul.msk.bf16.gmra.mxu0 %vm486_vm0, %v1925_v48 }
 0x1a2   : > { %v608_v62 = vpop.permute.xlu1 %607 }
 0x1a4   : > { %1856 = vmatmul.msk.bf16.gmra.mxu0 %vm486_vm0, %v1926_v51 }
 0x1b4   : > { %1857 = vmatmul.msk.bf16.gmra.mxu0 %vm486_vm0, %v1927_v53 }
 0x1c4   : > { %1858 = vmatmul.msk.bf16.gmra.mxu0 %vm486_vm0, %v1928_v54 }
 0x201   : > { %v702_v55 = vpop.f32.mrf.mxu0  ;;  %v727_v45 = vpop.f32.mrf.mxu1 }
 0x202   : > { %v703_v5 = vadd.f32 %v702_v55, %v588_v56 }
 0x209   : > { %v704_v57 = vpop.f32.mrf.mxu0  ;;  %v2340_v46 = vpop.f32.mrf.mxu1 }
 0x20a   : > { %v705_v11 = vadd.f32 %v704_v57, %v593_v1 }
 0x211   : > { %v707_v59 = vpop.f32.mrf.mxu0 }
 0x212   : > { %v708_v9 = vadd.f32 %v707_v59, %v598_v8  ;;  %v583_v59 = vld [vmem:[%s2486_s5 + $0x50] sm:$0xff] }
 0x214   : > { %v1996_v12 = vpack.i.bf16 %v708_v9, %v705_v11 }
 0x219   : > { %v709_v60 = vpop.f32.mrf.mxu0 }
 0x21a   : > { %v710_v20 = vadd.f32 %v709_v60, %v603_v19 }
 0x221   : > { %v712_v63 = vpop.f32.mrf.mxu0 }
 0x222   : > { %v713_v0 = vadd.f32 %v712_v63, %v608_v62 }
 0x224   : > { %864 = vxpose.xlu2.b32.start.end [1/1] (short) (narrow) %v713_v0, 8  ;;  %v582_v0 = vld [vmem:[%s2486_s5 + $0x48] sm:$0xff] }
 0x229   : > { %v714_v4 = vpop.f32.mrf.mxu0 }
 0x22a   : > { %v715_v6 = vadd.f32 %v714_v4, %v613_v58 }
 0x22c   : > { %v1989_v7 = vpack.i.bf16 %v715_v6, %v703_v5  ;;  %v628_v6 = vpop.permute.xlu1 %627 }
 0x22e   : > { %1990 = vxpose.xlu0.b32.start.end [1/1] (short) (narrow) %v1989_v7, 8 }
 0x231   : > { %v717_v10 = vpop.f32.mrf.mxu0 }
 0x232   : > { %v718_v15 = vadd.f32 %v717_v10, %v618_v14 }
 0x236   : > { %1997 = vxpose.xlu0.b32.start.end [1/1] (short) (narrow) %v1996_v12, 8 }
 0x239   : > { %v719_v16 = vpop.f32.mrf.mxu0 }
 0x23a   : > { %v720_v17 = vadd.f32 %v719_v16, %v623_v61 }
 0x23c   : > { %v2003_v18 = vpack.i.bf16 %v720_v17, %v718_v15 }
 0x23e   : > { %2004 = vxpose.xlu2.b32.start.end [1/1] (short) (narrow) %v2003_v18, 8 }
 0x246   : > { %828 = vxpose.xlu2.b32.start.end [1/1] (short) (narrow) %v710_v20, 8 }
 0x2a4   : > { %642 = vperm.xlu0 %1988, %v584_v21  }
 0x2bd   : > { %v880_v22 = vpop.trf.xlu2 }
 0x2be   : > { %v992_v23 = vpack.c.bf16 %v880_v22, %v880_v22 }
 0x2c0   : > { %v1133_v24 = vsel %vm1128_vm5, %v992_v23, 0 }
 0x2c1   : > { %1142 = vmatpush.bf16.xpose.msrb.mxu1 %v1133_v24 }
 0x2d2   : > { %v1991_v25 = vpop.trf.xlu0 }
 0x2d3   : > { %v1992_v26 = vunpack.i.l.bf16 %v1991_v25  ;;  %v1995_v27 = vunpack.i.h.bf16 %v1991_v25  ;;  %v722_v25 = vpop.f32.mrf.mxu0 }
 0x2d5   : > { %v860_v28 = vpack.c.bf16 %v1992_v26, %v1992_v26  ;;  %v993_v29 = vpack.c.bf16 %v1995_v27, %v1995_v27 }
 0x2d7   : > { %v2005_v30 = vpop.trf.xlu2  ;;  %1860 = vmatmul.msk.bf16.vlgmr.msrb.gmra.mxu1 %vm1128_vm5, %v860_v28  ;;  %v1152_v31 = vsel %vm1128_vm5, %v993_v29, 0 }
 0x2d8   : > { %v2009_v32 = vunpack.i.h.bf16 %v2005_v30  ;;  %1161 = vmatpush.bf16.xpose.msra.mxu2 %v1152_v31  ;;  %v2006_v33 = vunpack.i.l.bf16 %v2005_v30 }
 0x2da   : > { %v1998_v34 = vpop.trf.xlu0  ;;  %v994_v35 = vpack.c.bf16 %v2006_v33, %v2006_v33  ;;  %v995_v36 = vpack.c.bf16 %v2009_v32, %v2009_v32  ;;  %v723_v33 = vadd.f32 %v722_v25, %v628_v6 }
 0x2db   : > { %v1999_v37 = vunpack.i.l.bf16 %v1998_v34  ;;  %v2002_v41 = vunpack.i.h.bf16 %v1998_v34  ;;  %v724_v26 = vpop.f32.mrf.mxu0  ;;  %v1470_v34 = vld [vmem:[%s2488_s7 + $0x10] sm:$0xff] }
 0x2dc   : > { %v1171_v38 = vsel %vm1128_vm5, %v994_v35, 0  ;;  %v1190_v39 = vsel %vm1128_vm5, %v995_v36, 0  ;;  %v1469_v35 = vld [vmem:[%s2488_s7 + $0x8] sm:$0xff] }
 0x2dd   : > { %1180 = vmatpush.bf16.xpose.msra.mxu3 %v1171_v38  ;;  %v861_v40 = vpack.c.bf16 %v1999_v37, %v1999_v37  ;;  %1199 = vmatpush.bf16.xpose.msra.mxu1 %v1190_v39  ;;  %v862_v43 = vpack.c.bf16 %v2002_v41, %v2002_v41 }
 0x2df   : > { %1861 = vmatmul.msk.bf16.vlgmr.msra.gmra.mxu2 %vm1128_vm5, %v861_v40  ;;  %v844_v42 = vpop.trf.xlu2 }
 0x2e0   : > { %v863_v44 = vpack.c.bf16 %v844_v42, %v844_v42 }
 0x2e4   : > { %1862 = vmatmul.msk.bf16.vlgmr.msra.gmra.mxu3 %vm1128_vm5, %v862_v43 }
 0x2e7   : > { %1863 = vmatmul.msk.bf16.vlgmr.msra.gmra.mxu1 %vm1128_vm5, %v863_v44 }
 0x316   : > { %v643_v1 = vpop.permute.xlu0 %642 }
 0x317   : > { %v730_v32 = vadd.f32 %v2340_v46, %v643_v1 }
 0x354   : > { %v1144_v47 = vpop.f32.mrf.mxu1 }
 0x355   : > { %v1205_v48 = vmul.f32 0.35355338, %v1144_v47 }
 0x357   : > { %v1209_v49 = vsel %vm1128_vm5, %v1205_v48, -inf }
 0x358   : > { %1210 = vmax.xlane.f32.xlu0 %v1209_v49 }
 0x35c   : > { %v1146_v50 = vpop.f32.mrf.mxu1 }
 0x362   : > { %v1163_v51 = vpop.f32.mrf.mxu2 }
 0x363   : > { %v1206_v52 = vmul.f32 0.35355338, %v1163_v51 }
 0x364   : > { %v1201_v53 = vpop.f32.mrf.mxu1 }
 0x365   : > { %v1208_v54 = vmul.f32 0.35355338, %v1201_v53  ;;  %v1212_v55 = vsel %vm1128_vm5, %v1206_v52, -inf }
 0x366   : > { %1213 = vmax.xlane.f32.xlu1 %v1212_v55 }
 0x367   : > { %v1182_v56 = vpop.f32.mrf.mxu3  ;;  %v1218_v57 = vsel %vm1128_vm5, %v1208_v54, -inf }
 0x368   : > { %1219 = vmax.xlane.f32.xlu2 %v1218_v57  ;;  %v1207_v58 = vmul.f32 0.35355338, %v1182_v56 }
 0x36a   : > { %v1165_v60 = vpop.f32.mrf.mxu2  ;;  %v1215_v62 = vsel %vm1128_vm5, %v1207_v58, -inf }
 0x36c   : > { %637 = vperm.xlu0 %1988, %v583_v59   ;;  %v1203_v61 = vpop.f32.mrf.mxu1 }
 0x36e   : > { %1216 = vmax.xlane.f32.xlu1 %v1215_v62 }
 0x36f   : > { %v1184_v63 = vpop.f32.mrf.mxu3 }
 0x380   : > { %632 = vperm.xlu2 %1987, %v582_v0  }
 0x3cb   : > { %v1211_v3 = vpop.xlane.xlu0 %1210 }
 0x3cc   : > { %v1221_v4 = vsub.f32 %v1205_v48, %v1211_v3 }
 0x3ce   : > { %v1225_v5 = vmul.f32 1.442695, %v1221_v4 }
 0x3d0   : > { %2041 = vpow2.f32 %v1225_v5 }
 0x3d6   : > { %v2352_v7 = vpop.eup %2041 }
 0x3d7   : > { %v1233_v8 = vsel %vm1128_vm5, %v2352_v7, 0.0 }
 0x3d8   : > { %1234 = vadd.xlane.f32.xlu1 %v1233_v8 }
 0x3d9   : > { %v1214_v9 = vpop.xlane.xlu1 %1213 }
 0x3da   : > { %v1222_v10 = vsub.f32 %v1206_v52, %v1214_v9 }
 0x3db   : > { %v1220_v11 = vpop.xlane.xlu2 %1219 }
 0x3dc   : > { %v1227_v12 = vmul.f32 1.442695, %v1222_v10  ;;  %v1224_v14 = vsub.f32 %v1208_v54, %v1220_v11 }
 0x3de   : > { %2043 = vpow2.f32 %v1227_v12  ;;  %v1231_v15 = vmul.f32 1.442695, %v1224_v14  ;;  %v638_v28 = vpop.permute.xlu0 %637  ;;  %v1468_v12 = vld [vmem:[%s2488_s7] sm:$0xff]  ;;  %v1471_v14 = vld [vmem:[%s2488_s7 + $0x18] sm:$0xff] }
 0x3df   : > { %v728_v30 = vadd.f32 %v727_v45, %v638_v28 }
 0x3e0   : > { %2045 = vpow2.f32 %v1231_v15 }
 0x3e1   : > { %v1217_v16 = vpop.xlane.xlu1 %1216 }
 0x3e2   : > { %v1223_v17 = vsub.f32 %v1207_v58, %v1217_v16 }
 0x3e3   : > { %v633_v27 = vpop.permute.xlu2 %632 }
 0x3e4   : > { %v2044_v18 = vpop.eup %2043  ;;  %v1229_v19 = vmul.f32 1.442695, %v1223_v17  ;;  %v725_v29 = vadd.f32 %v724_v26, %v633_v27 }
 0x3e5   : > { %v1236_v20 = vsel %vm1128_vm5, %v2044_v18, 0.0 }
 0x3e6   : > { %v2357_v21 = vpop.eup %2045  ;;  %2047 = vpow2.f32 %v1229_v19  ;;  %1237 = vadd.xlane.f32.xlu1 %v1236_v20  ;;  %v2010_v31 = vpack.i.bf16 %v728_v30, %v725_v29 }
 0x3e7   : > { %v1242_v22 = vsel %vm1128_vm5, %v2357_v21, 0.0 }
 0x3e8   : > { %1243 = vadd.xlane.f32.xlu0 %v1242_v22 }
 0x3ec   : > { %v2048_v23 = vpop.eup %2047 }
 0x3ed   : > { %v1239_v24 = vsel %vm1128_vm5, %v2048_v23, 0.0 }
 0x3ee   : > { %1240 = vadd.xlane.f32.xlu2 %v1239_v24  ;;  %v1931_v24 = vld [vmem:[%s2487_s6 + $0x8] sm:$0xff] }
 0x411   : > { %2011 = vxpose.xlu0.b32.start.end [1/1] (short) (narrow) %v2010_v31, 8 }
 0x417   : > { %1092 = vxpose.xlu2.b32.start.end [1/1] (short) (narrow) %v730_v32, 8 }
 0x420   : > { %996 = vxpose.xlu1.b32.start.end [1/1] (short) (narrow) %v723_v33, 8 }
 0x44b   : > { %v1235_v36 = vpop.xlane.xlu1 %1234 }
 0x459   : > { %v1238_v37 = vpop.xlane.xlu1 %1237 }
 0x45a   : > { %2049 = vrcp.f32 %v1238_v37 }
 0x45b   : > { %v1244_v39 = vpop.xlane.xlu0 %1243 }
 0x460   : > { %v2050_v40 = vpop.eup %2049 }
 0x461   : > { %v1241_v38 = vpop.xlane.xlu2 %1240  ;;  %v1250_v45 = vmul.f32 %v2050_v40, %v2044_v18 }
 0x462   : > { %2051 = vrcp.f32 %v1241_v38 }
 0x463   : > { %2053 = vrcp.f32 %v1235_v36  ;;  %v1254_v52 = vpack.c.bf16 %v1250_v45, %v1250_v45 }
 0x464   : > { %2055 = vrcp.f32 %v1244_v39 }
 0x468   : > { %v2052_v41 = vpop.eup %2051 }
 0x469   : > { %v1251_v46 = vmul.f32 %v2052_v41, %v2048_v23  ;;  %v2054_v54 = vpop.eup %2053  ;;  %v1930_v23 = vld [vmem:[%s2487_s6] sm:$0xff] }
 0x46a   : > { %v1249_v57 = vmul.f32 %v2054_v54, %v2352_v7  ;;  %v2056_v62 = vpop.eup %2055 }
 0x46b   : > { %v1255_v51 = vpack.c.bf16 %v1251_v46, %v1251_v46  ;;  %v1252_v63 = vmul.f32 %v2056_v62, %v2357_v21 }
 0x46c   : > { %v1253_v61 = vpack.c.bf16 %v1249_v57, %v1249_v57 }
 0x46d   : > { %v1256_v0 = vpack.c.bf16 %v1252_v63, %v1252_v63 }
 0x47f   : > { %1484 = vperm.xlu0 %1988, %v1470_v34  }
 0x480   : > { %1479 = vperm.xlu2 %1987, %v1469_v35  }
 0x4b0   : > { %v1108_v53 = vpop.trf.xlu2 }
 0x4b1   : > { %v1127_v55 = vpack.c.bf16 %v1108_v53, %v1108_v53 }
 0x4b3   : > { %v1319_v59 = vsel %vm1260_vm6, %v1127_v55, 0 }
 0x4b5   : > { %v2012_v42 = vpop.trf.xlu0 }
 0x4b6   : > { %v2016_v43 = vunpack.i.h.bf16 %v2012_v42  ;;  %v2013_v44 = vunpack.i.l.bf16 %v2012_v42  ;;  %v1933_v42 = vld [vmem:[%s2491_s10 + $0x8] sm:$0xff] }
 0x4b8   : > { %v1125_v47 = vpack.c.bf16 %v2013_v44, %v2013_v44  ;;  %v1126_v48 = vpack.c.bf16 %v2016_v43, %v2016_v43 }
 0x4ba   : > { %v1281_v49 = vsel %vm1260_vm6, %v1125_v47, 0  ;;  %v1300_v50 = vsel %vm1260_vm6, %v1126_v48, 0 }
 0x4bb   : > { %1290 = vmatpush.bf16.msrb.mxu3 %v1281_v49  ;;  %1309 = vmatpush.bf16.msrb.mxu1 %v1300_v50 }
 0x4be   : > { %1865 = vmatmul.msk.bf16.vlgmr.msrb.gmra.mxu3 %vm1128_vm5, %v1254_v52  ;;  %1866 = vmatmul.msk.bf16.vlgmr.msrb.gmra.mxu1 %vm1128_vm5, %v1255_v51 }
 0x4bf   : > { %1625 = vmatpush.bf16.msra.mxu1 %v1933_v42 }
 0x4c4   : > { %v1012_v56 = vpop.trf.xlu1 }
 0x4c5   : > { %v1124_v58 = vpack.c.bf16 %v1012_v56, %v1012_v56 }
 0x4c7   : > { %v1262_v60 = vsel %vm1260_vm6, %v1124_v58, 0  ;;  %v2033_v58 = vld [vmem:[%s2489_s8] ss:$0 sm:$0xff] }
 0x4c8   : > { %1271 = vmatpush.bf16.msrb.mxu2 %v1262_v60  ;;  %v2034_v60 = vld [vmem:[%s2490_s9] ss:$0 sm:$0xff] }
 0x4cb   : > { %1864 = vmatmul.msk.bf16.vlgmr.msrb.gmra.mxu2 %vm1128_vm5, %v1253_v61 }
 0x4cc   : > { %1328 = vmatpush.bf16.msra.mxu2 %v1319_v59 }
 0x4da   : > { %v1480_v28 = vpop.permute.xlu2 %1479 }
 0x4db   : > { %1867 = vmatmul.msk.bf16.vlgmr.msra.gmra.mxu2 %vm1128_vm5, %v1256_v0  ;;  %v1941_v0 = vld [vmem:[%s2493_s12 + $0x38] sm:$0xff] }
 0x4dc   : > { %1721 = vmatpush.bf16.msrb.mxu2 %v1941_v0 }
 0x4f1   : > { %v1485_v31 = vpop.permute.xlu0 %1484 }
 0x53b   : > { %v1311_v1 = vpop.f32.mrf.mxu1 }
 0x541   : > { %v1292_v3 = vpop.f32.mrf.mxu3 }
 0x543   : > { %v1313_v4 = vpop.f32.mrf.mxu1 }
 0x544   : > { %v1938_v4 = vld [vmem:[%s2493_s12 + $0x20] sm:$0xff] }
 0x549   : > { %v1294_v5 = vpop.f32.mrf.mxu3 }
 0x54a   : > { %v1937_v5 = vld [vmem:[%s2493_s12 + $0x18] sm:$0xff] }
 0x54e   : > { %v1273_v6 = vpop.f32.mrf.mxu2 }
 0x54f   : > { %v2024_v11 = vpack.i.bf16 %v1292_v3, %v1273_v6  ;;  %v1939_v3 = vld [vmem:[%s2493_s12 + $0x28] sm:$0xff]  ;;  %v1936_v6 = vld [vmem:[%s2493_s12 + $0x10] sm:$0xff] }
 0x556   : > { %v1275_v7 = vpop.f32.mrf.mxu2 }
 0x557   : > { %v1935_v7 = vld [vmem:[%s2493_s12 + $0x8] sm:$0xff] }
 0x55e   : > { %v1330_v8 = vpop.f32.mrf.mxu2 }
 0x55f   : > { %v2017_v9 = vpack.i.bf16 %v1330_v8, %v1311_v1  ;;  %v1940_v1 = vld [vmem:[%s2493_s12 + $0x30] sm:$0xff]  ;;  %v2035_v8 = vld [vmem:[%s2492_s11] ss:$0 sm:$0xff] }
 0x560   : > { %1722 = vmatpush.bf16.msrb.mxu2 %v1940_v1 }
 0x561   : > { %2018 = vxpose.xlu1.b32.start.end [1/1] (short) (narrow) %v2017_v9, 8  ;;  %v1934_v9 = vld [vmem:[%s2493_s12] sm:$0xff] }
 0x564   : > { %1723 = vmatpush.bf16.msrb.mxu2 %v1939_v3 }
 0x566   : > { %v1332_v10 = vpop.f32.mrf.mxu2 }
 0x568   : > { %1724 = vmatpush.bf16.msrb.mxu2 %v1938_v4 }
 0x569   : > { %2025 = vxpose.xlu1.b32.start.end [1/1] (short) (narrow) %v2024_v11, 8 }
 0x56c   : > { %1725 = vmatpush.bf16.msrb.mxu2 %v1937_v5 }
 0x570   : > { %1726 = vmatpush.bf16.msrb.mxu2 %v1936_v6 }
 0x574   : > { %1727 = vmatpush.bf16.msrb.mxu2 %v1935_v7 }
 0x578   : > { %1728 = vmatpush.bf16.msrb.mxu2 %v1934_v9 }
 0x5c3   : > { %1474 = vperm.xlu1 %1986, %v1468_v12  }
 0x5cb   : > { %1489 = vperm.xlu1 %1986, %v1471_v14  }
 0x605   : > { %v2019_v15 = vpop.trf.xlu1 }
 0x606   : > { %v2023_v16 = vunpack.i.h.bf16 %v2019_v15  ;;  %v2020_v17 = vunpack.i.l.bf16 %v2019_v15 }
 0x608   : > { %v1467_v18 = vpack.c.bf16 %v2023_v16, %v2020_v17 }
 0x60a   : > { %1514 = vmatpush.bf16.msra.mxu3 %v1467_v18 }
 0x60d   : > { %v2026_v19 = vpop.trf.xlu1 }
 0x60e   : > { %v2030_v20 = vunpack.i.h.bf16 %v2026_v19  ;;  %v2027_v21 = vunpack.i.l.bf16 %v2026_v19 }
 0x610   : > { %v1466_v22 = vpack.c.bf16 %v2030_v20, %v2027_v21 }
 0x612   : > { %1515 = vmatpush.bf16.msra.mxu3 %v1466_v22 }
 0x615   : > { %1876 = vmatmul.msk.bf16.vlgmr.msra.gmra.mxu3 %vm486_vm0, %v1930_v23 }
 0x625   : > { %1877 = vmatmul.msk.bf16.gmra.mxu3 %vm486_vm0, %v1931_v24 }
 0x635   : > { %v1475_v25 = vpop.permute.xlu1 %1474 }
 0x63d   : > { %v1490_v34 = vpop.permute.xlu1 %1489 }
 0x698   : > { %v1517_v26 = vpop.f32.mrf.mxu3 }
 0x699   : > { %v1518_v27 = vadd.f32 %v1517_v26, %v1475_v25 }
 0x69b   : > { %1527 = vxpose.xlu1.b32.start [1/4] (short) (narrow) %v1518_v27, 8 }
 0x6a0   : > { %v1519_v29 = vpop.f32.mrf.mxu3 }
 0x6a1   : > { %v1520_v30 = vadd.f32 %v1519_v29, %v1480_v28  ;;  %v2036_v29 = vld [vmem:[%s2494_s13] ss:$0 sm:$0xff] }
 0x6a3   : > { %1528 = vxpose.xlu1.b32.cont [2/4] (short) (narrow) %v1520_v30, 8 }
 0x6a8   : > { %v1522_v32 = vpop.f32.mrf.mxu3 }
 0x6a9   : > { %v1523_v33 = vadd.f32 %v1522_v32, %v1485_v31 }
 0x6ab   : > { %1529 = vxpose.xlu1.b32.cont [3/4] (short) (narrow) %v1523_v33, 8 }
 0x6b0   : > { %v1524_v35 = vpop.f32.mrf.mxu3 }
 0x6b1   : > { %v1525_v36 = vadd.f32 %v1524_v35, %v1490_v34 }
 0x6b3   : > { %1530 = vxpose.xlu1.b32.end [4/4] (short) (narrow) %v1525_v36, 8 }
 0x73f   : > { %v1543_v37 = vpop.trf.xlu1 }
 0x740   : > { %v2394_v38 = vadd.f32 %v1543_v37, %v2260_v2  ;;  %v1932_v2 = vld [vmem:[%s2491_s10] sm:$0xff] }
 0x741   : > { %1626 = vmatpush.bf16.msra.mxu1 %v1932_v2 }
 0x742   : > { %v1562_v39 = vsel %vm486_vm0, %v2394_v38, 0.0  ;;  %v1566_v40 = vmul.f32 %v2394_v38, %v2394_v38 }
 0x743   : > { %1563 = vadd.xlane.f32.xlu2 %v1562_v39 }
 0x744   : > { %v1567_v41 = vsel %vm486_vm0, %v1566_v40, 0.0 }
 0x745   : > { %1568 = vadd.xlane.f32.xlu0 %v1567_v41 }
 0x7b6   : > { %v1564_v43 = vpop.xlane.xlu2 %1563 }
 0x7b7   : > { %v1565_v44 = vmul.f32 %v1564_v43, %v2267_v13 }
 0x7b8   : > { %v1569_v45 = vpop.xlane.xlu0 %1568 }
 0x7b9   : > { %v1571_v46 = vmul.f32 %v1565_v44, %v1565_v44  ;;  %v1570_v47 = vmul.f32 %v1569_v45, %v2267_v13  ;;  %v1574_v57 = vsub.f32 %v2394_v38, %v1565_v44 }
 0x7bb   : > { %v1572_v48 = vsub.f32 %v1570_v47, %v1571_v46 }
 0x7bd   : > { %v1573_v49 = vmax.f32 %v1572_v48, 0.0 }
 0x7bf   : > { %v1575_v50 = vadd.f32 1e-05, %v1573_v49 }
 0x7c1   : > { %2057 = vrsqrt.f32 %v1575_v50  ;;  %vm1582_vm8 = vweird.f32 %v1575_v50 }
 0x7c7   : > { %v2058_v51 = vpop.eup %2057 }
 0x7c8   : > { %v1577_v52 = vmul.f32 %v2058_v51, %v1575_v50  ;;  %vm1583_vm7 = vweird.f32 %v2058_v51 }
 0x7c9   : > { %vm1584_vm9 = vmor %vm1582_vm8, %vm1583_vm7 }
 0x7ca   : > { %v1578_v53 = vmul.f32 %v2058_v51, %v1577_v52 }
 0x7cc   : > { %v1579_v54 = vmul.f32 0.5, %v1578_v53 }
 0x7ce   : > { %v1580_v55 = vsub.f32 1.5, %v1579_v54 }
 0x7d0   : > { %v1581_v56 = vmul.f32 %v2058_v51, %v1580_v55 }
 0x7d2   : > { %v1585_v13 = vsel %vm1584_vm9, %v2058_v51, %v1581_v56 }
 0x7d3   : > { %v1586_v59 = vmul.f32 %v1585_v13, %v1574_v57 }
 0x7d5   : > { %v1590_v61 = vmul.f32 %v2033_v58, %v1586_v59 }
 0x7d7   : > { %v1594_v62 = vadd.f32 %v2034_v60, %v1590_v61 }
 0x7d9   : > { %v1595_v63 = vpack.c.bf16 %v1594_v62, %v1594_v62 }
 0x7db   : > { %1886 = vmatmul.msk.bf16.vlgmr.msra.gmra.mxu1 %vm486_vm0, %v1595_v63 }
 0x858   : > { %v1628_v10 = vpop.f32.mrf.mxu1 }
 0x859   : > { %v1629_v11 = vadd.f32 %v2035_v8, %v1628_v10 }
 0x85b   : > { %v1887_v12 = vmul.f32 -1.442695, %v1629_v11 }
 0x85d   : > { %2059 = vpow2.f32 %v1887_v12 }
 0x860   : > { %v1630_v14 = vpop.f32.mrf.mxu1 }
 0x863   : > { %v2060_v15 = vpop.eup %2059 }
 0x864   : > { %v1635_v16 = vadd.f32 1.0, %v2060_v15 }
 0x866   : > { %2061 = vrcp.f32 %v1635_v16  ;;  %v1647_v20 = vand.u32 2147483648, %v1635_v16  ;;  %v1645_v22 = vand.u32 2147483647, %v1635_v16  ;;  %vm1641_vm11 = vweird.f32 %v1635_v16 }
 0x868   : > { %v1648_v24 = vor.u32 1.1754944e-38, %v1647_v20  ;;  %vm1646_vm13 = vcmp.eq.f32.partialorder %v1645_v22, 8.507059e+37 }
 0x86c   : > { %v2062_v17 = vpop.eup %2061 }
 0x86d   : > { %v1637_v18 = vmul.f32 %v2062_v17, %v1635_v16  ;;  %vm1642_vm10 = vweird.f32 %v2062_v17 }
 0x86e   : > { %vm1643_vm12 = vmor %vm1641_vm11, %vm1642_vm10 }
 0x86f   : > { %v1638_v19 = vsub.f32 1.0, %v1637_v18 }
 0x871   : > { %v1639_v21 = vmul.f32 %v2062_v17, %v1638_v19 }
 0x873   : > { %v1640_v23 = vadd.f32 %v2062_v17, %v1639_v21 }
 0x875   : > { %v1644_v25 = vsel %vm1643_vm12, %v2062_v17, %v1640_v23 }
 0x876   : > { %v1649_v26 = vsel %vm1646_vm13, %v1648_v24, %v1644_v25 }
 0x877   : > { %v1651_v27 = vmul.f32 %v1649_v26, %v1629_v11 }
 0x879   : > { %v1652_v28 = vpack.c.bf16 %v1651_v27, %v1651_v27 }
 0x87b   : > { %1729 = vmatmul.bf16.vlgmr.msrb.gmra.mxu2 %v1652_v28 }
 0x8fe   : > { %v1730_v30 = vpop.f32.mrf.mxu2 }
 0x8ff   : > { %v1731_v31 = vadd.f32 %v2036_v29, %v1730_v30 }
 0x901   : > { %v1734_v32 = vadd.f32 %v1731_v31, %v2394_v38 }
 0x903   : > { %1735 = vst.msk [vmem:[%s471_s28] sm:$0xff] %vm486_vm0, %v1734_v32 }
 0x904   : > { %2090 = shalt.err (!%p2087_p3)
}
 0x905   : > { %1944 = dma.vmem_to_hbm [thread:$0]  (%p2242_p5), %s1750_s18, 128, %s1752_s2, %s1737_s17  }
 0x906   : > { %v1732_v33 = vpop.f32.mrf.mxu2 }
 0x907 PF: > { %p1950_p4 = scmp.ge.s32.totalorder %s2125_s16, 2  ;;  %s1763_s1 = sand.u32 1, %s2113_s29  }
 0x908   : > { %s1764_s0 = scalar_lea.sflag [#allocation3], %s1763_s1 }
 0x909   : > { %p1947_p7 = pnand %p1950_p4, %p2246_p6 }
 0x90b   : > { %p1948_p8 = pneg %p1947_p7 }
 0x90d   : > { %2108 = dma.done.wait (%p1948_p8), %s1764_s0, 128  }
 0x90e   : > { %2110 = vsyncadd (%p1948_p8), %s1764_s0, 4294967168  ;;  %s2507_s3 = sld [smem:[#allocation5_spill]]  ;;  %p24_p9 = scmp.ge.s32.totalorder %s2229_s19, 4  }
 0x90f   : > { %s2508_s29 = smov %s2117_s30  ;;  %s2509_s30 = smov %s2121_s15 }
 0x910   : > { %s2511_s16 = smov %s2229_s19  ;;  %26 = sbr.rel (!%p24_p9) target bundleno = 8 (0x8), region = 114 }
 0x914   : > { %s2510_s15 = smov %s2507_s3 }
 0x915   :  { %1770 = vsyncpa [#allocation3], 1 }
 0x916   :  { %1772 = vsyncpa [#allocation3 + $0x1], 1 }

</bundles_post_ra>
